<compile_context>
chip_gen: v7x
topology: tpu7x:2x2x1
jax: 0.10.0
libtpu: 0.0.40
codegen_flags: <defaults>
</compile_context>

<pallas_src>
import functools

import jax
import jax.numpy as jnp
import numpy as np
from jax.experimental import pallas as pl
from jax.experimental.pallas import tpu as pltpu


# ----------------------------- Pallas kernels ---------------------------------
def reg_gemm_kernel(x_ref, w_ref, b_ref, uy_ref, *, tk):
    """[unit | y] = x @ W_cat + b_cat.

    x_ref:  (B, LD)  bf16, resident across the whole grid (sliced per k step).
    w_ref:  (tk, tn) bf16 weight tile streamed from HBM.
    uy_ref: (B, tn)  f32 output block, resident across the k axis (accumulator).
    """
    k = pl.program_id(1)

    @pl.when(k == 0)
    def _():
        uy_ref[...] = jnp.zeros_like(uy_ref)

    kk = pl.multiple_of(k * tk, tk)
    uy_ref[...] += jnp.dot(
        x_ref[:, pl.ds(kk, tk)],
        w_ref[...],
        preferred_element_type=jnp.float32,
    )

    @pl.when(k == pl.num_programs(1) - 1)
    def _():
        uy_ref[...] += b_ref[...]


def gate_fuse_kernel(unit_ref, wg_ref, bg_ref, y_ref, dec_ref,
                     out_ref, gate_ref, *, tk):
    """gate = sigmoid(unit @ W_gate + b_gate); out = y + gate * dec_emb (epilogue).

    unit_ref: (B, PD) f32, resident (left half of uy), sliced per k step.
    wg_ref:   (tk, tn) bf16 weight tile streamed from HBM.
    gate_ref: (B, tn) f32 output block, doubles as the accumulator.
    """
    k = pl.program_id(1)

    @pl.when(k == 0)
    def _():
        gate_ref[...] = jnp.zeros_like(gate_ref)

    kk = pl.multiple_of(k * tk, tk)
    lhs = unit_ref[:, pl.ds(kk, tk)].astype(jnp.bfloat16)   # tiny (B, tk) cast
    gate_ref[...] += jnp.dot(lhs, wg_ref[...], preferred_element_type=jnp.float32)

    @pl.when(k == pl.num_programs(1) - 1)
    def _():
        g = jax.nn.sigmoid(gate_ref[...] + bg_ref[...])
        gate_ref[...] = g
        out_ref[...] = y_ref[...] + g * dec_ref[...]


# ------------------------------- helpers ---------------------------------------
def _pick_tile(dim, target):
    """Largest divisor of `dim` that is a multiple of 256 (preferred) or 128 and <= target.

    Falls back to the full dim if `dim` is not 128-divisible.
    """
    for align in (256, 128):
        best = None
        t = align
        while t <= min(dim, target):
            if dim % t == 0:
                best = t
            t += align
        if best is not None:
            return best
    # TODO(synk): for large non-128-divisible dims switch to pl.cdiv grids with a
    # masked last tile instead of a single full-dim tile.
    return dim


def _pick_tn(n, target):
    """Like _pick_tile, but keeps >= 2 blocks on the parallel axis when possible."""
    cap = max(128, n // 2)
    return _pick_tile(n, min(target, cap))


def _compiler_params():
    return pltpu.CompilerParams(
        dimension_semantics=("parallel", "arbitrary"),
        vmem_limit_bytes=40 * 1024 * 1024,   # fits v7x's 64 MiB VMEM with headroom
    )


# ------------------------------- wrapper --------------------------------------
def adaptive_fusion(
    ts_enc_x, dec_inp, dec_inp_mark,
    w_reg_cs, b_reg_cs, w_reg, b_reg, w_gate, b_gate,
    wc0, wc1, wc2, w_time, pos_emb,
    pred_len, tn=None, tk=None,
):
    B, L, d_model = ts_enc_x.shape
    P = pred_len
    LD = L * d_model
    PD = P * d_model

    # bf16 LHS -> single-pass bf16 MXU path (weights stay bf16, accumulation f32).
    x_flat = ts_enc_x.reshape(B, LD).astype(jnp.bfloat16)

    # ---- phase 1: fused reg_cs / reg GEMM (shared resident LHS, one weight stream) ----
    w_cat = jnp.concatenate([w_reg_cs, w_reg], axis=1)                       # (LD, 2*PD) bf16
    b_cat = jnp.concatenate([b_reg_cs, b_reg], axis=1).astype(jnp.float32)   # (1, 2*PD)

    tk1 = tk if tk is not None else _pick_tile(LD, 2048)
    tn1 = tn if tn is not None else _pick_tn(2 * PD, 1024)
    assert LD % tk1 == 0 and (2 * PD) % tn1 == 0
    grid1 = (2 * PD // tn1, LD // tk1)

    uy = pl.pallas_call(
        functools.partial(reg_gemm_kernel, tk=tk1),
        out_shape=jax.ShapeDtypeStruct((B, 2 * PD), jnp.float32),
        grid_spec=pltpu.PrefetchScalarGridSpec(
            num_scalar_prefetch=0,
            grid=grid1,
            in_specs=[
                pl.BlockSpec((B, LD), lambda j, k: (0, 0)),       # x, resident
                pl.BlockSpec((tk1, tn1), lambda j, k: (k, j)),    # W_cat (bf16 stream)
                pl.BlockSpec((1, tn1), lambda j, k: (0, j)),      # b_cat
            ],
            out_specs=pl.BlockSpec((B, tn1), lambda j, k: (0, j)),
        ),
        compiler_params=_compiler_params(),
        cost_estimate=pl.CostEstimate(
            flops=2 * B * LD * 2 * PD,
            transcendentals=0,
            bytes_accessed=LD * 2 * PD * 2 + B * LD * 2 + B * 2 * PD * 4 + 2 * PD * 4,
        ),
    )(x_flat, w_cat, b_cat)

    # ---- decoder DataEmbedding for the last P steps (plain jnp: tiny GEMM, K=3*c_in+mark) ----
    # A dedicated pallas_call here was launch/masked-store dominated; XLA fuses this fine.
    dm1 = jnp.roll(dec_inp, 1, axis=1)[:, -P:, :]    # x[t-1] (circular)
    d0 = dec_inp[:, -P:, :]                          # x[t]
    dp1 = jnp.roll(dec_inp, -1, axis=1)[:, -P:, :]   # x[t+1] (circular)
    mk = dec_inp_mark[:, -P:, :]
    dcat = jnp.concatenate([dm1, d0, dp1, mk], axis=-1)                       # (B, P, kc)
    w_emb = jnp.concatenate([wc0, wc1, wc2, w_time], axis=0).astype(jnp.float32)
    dec_emb = jnp.einsum("bpk,kd->bpd", dcat.astype(jnp.float32), w_emb) \
        + pos_emb[-P:, :][None].astype(jnp.float32)
    dec_flat = dec_emb.reshape(B, PD)                # lane-dense for the fusion epilogue

    # ---- phase 2: gate GEMM streamed over tiles + sigmoid + fusion epilogue ----
    tk2 = tk if tk is not None else _pick_tile(PD, 2048)
    tn2 = tn if tn is not None else _pick_tn(PD, 1024)
    assert PD % tk2 == 0 and PD % tn2 == 0
    grid2 = (PD // tn2, PD // tk2)
    n_y_off = PD // tn2   # block-index offset of the y half inside uy

    out_f, gate_f = pl.pallas_call(
        functools.partial(gate_fuse_kernel, tk=tk2),
        out_shape=(
            jax.ShapeDtypeStruct((B, PD), jnp.float32),
            jax.ShapeDtypeStruct((B, PD), jnp.float32),
        ),
        grid_spec=pltpu.PrefetchScalarGridSpec(
            num_scalar_prefetch=0,
            grid=grid2,
            in_specs=[
                pl.BlockSpec((B, PD), lambda j, k: (0, 0)),                      # unit (left half of uy), resident
                pl.BlockSpec((tk2, tn2), lambda j, k: (k, j)),                   # w_gate (bf16 stream)
                pl.BlockSpec((1, tn2), lambda j, k: (0, j)),                     # b_gate
                pl.BlockSpec((B, tn2), lambda j, k, off=n_y_off: (0, j + off)),  # y (right half of uy)
                pl.BlockSpec((B, tn2), lambda j, k: (0, j)),                     # dec_flat
            ],
            out_specs=(
                pl.BlockSpec((B, tn2), lambda j, k: (0, j)),
                pl.BlockSpec((B, tn2), lambda j, k: (0, j)),
            ),
        ),
        compiler_params=_compiler_params(),
        cost_estimate=pl.CostEstimate(
            flops=2 * B * PD * PD,
            transcendentals=B * PD,
            bytes_accessed=PD * PD * 2 + 5 * B * PD * 4 + PD * 4,
        ),
    )(uy, w_gate, b_gate, uy, dec_flat)

    return out_f.reshape(B, P, d_model), gate_f.reshape(B, P, d_model)


# ------------------------------ reference (plain JAX) --------------------------
def reference_forward(
    ts_enc_x, dec_inp, dec_inp_mark,
    w_reg_cs, b_reg_cs, w_reg, b_reg, w_gate, b_gate,
    wc0, wc1, wc2, w_time, pos_emb, pred_len,
):
    B, L, d_model = ts_enc_x.shape
    x = ts_enc_x.reshape(B, L * d_model)
    unit = x @ w_reg_cs.astype(jnp.float32) + b_reg_cs[0]
    y = x @ w_reg.astype(jnp.float32) + b_reg[0]
    g = jax.nn.sigmoid(unit @ w_gate.astype(jnp.float32) + b_gate[0])
    dm1 = jnp.roll(dec_inp, 1, axis=1)
    dp1 = jnp.roll(dec_inp, -1, axis=1)
    token = dm1 @ wc0 + dec_inp @ wc1 + dp1 @ wc2
    temporal = dec_inp_mark @ w_time
    dec_info = token + temporal + pos_emb[None]
    dec_last = dec_info[:, -pred_len:, :]
    gate3 = g.reshape(B, pred_len, d_model)
    out = y.reshape(B, pred_len, d_model) + gate3 * dec_last
    return out, gate3


def make_positional_embedding(max_len, d_model):
    pos = np.arange(max_len, dtype=np.float32)[:, None]
    div = np.exp(np.arange(0, d_model, 2, dtype=np.float32) * -(np.log(10000.0) / d_model))
    pe = np.zeros((max_len, d_model), dtype=np.float32)
    pe[:, 0::2] = np.sin(pos * div)
    pe[:, 1::2] = np.cos(pos * div)
    return jnp.asarray(pe)


if __name__ == "__main__":
    # config (ts_distil=False, embed='timeF', freq='h' -> mark_dim=4, exps=True)
    B = 2
    seq_len = 8          # L of ts_enc_x
    pred_len = 8
    d_model = 32
    c_in = 4             # ts_dec_in
    mark_dim = 4
    label_len = 4
    dec_len = label_len + pred_len

    LD = seq_len * d_model
    PD = pred_len * d_model

    key = jax.random.PRNGKey(0)
    keys = jax.random.split(key, 16)

    # inputs
    ts_enc_x = jax.random.normal(keys[0], (B, seq_len, d_model), jnp.float32)
    dec_inp = jax.random.normal(keys[1], (B, dec_len, c_in), jnp.float32)
    dec_inp_mark = jax.random.normal(keys[2], (B, dec_len, mark_dim), jnp.float32)

    # deterministic synthetic parameters (stored as (in, out); equals PyTorch W.T)
    # big linears stored in bf16 (kernel is weight-bandwidth bound); biases in f32
    s = 0.05
    w_reg_cs = (s * jax.random.normal(keys[3], (LD, PD), jnp.float32)).astype(jnp.bfloat16)
    b_reg_cs = s * jax.random.normal(keys[4], (1, PD), jnp.float32)
    w_reg = (s * jax.random.normal(keys[5], (LD, PD), jnp.float32)).astype(jnp.bfloat16)
    b_reg = s * jax.random.normal(keys[6], (1, PD), jnp.float32)
    w_gate = (s * jax.random.normal(keys[7], (PD, PD), jnp.float32)).astype(jnp.bfloat16)
    b_gate = s * jax.random.normal(keys[8], (1, PD), jnp.float32)

    # TokenEmbedding Conv1d(c_in, d_model, k=3, circular, bias=False): three taps (C_in, d)
    wc0 = s * jax.random.normal(keys[9], (c_in, d_model), jnp.float32)
    wc1 = s * jax.random.normal(keys[10], (c_in, d_model), jnp.float32)
    wc2 = s * jax.random.normal(keys[11], (c_in, d_model), jnp.float32)

    # TimeFeatureEmbedding Linear(mark_dim, d_model, bias=False)
    w_time = s * jax.random.normal(keys[12], (mark_dim, d_model), jnp.float32)

    pos_emb = make_positional_embedding(dec_len, d_model)

    args = (ts_enc_x, dec_inp, dec_inp_mark,
            w_reg_cs, b_reg_cs, w_reg, b_reg, w_gate, b_gate,
            wc0, wc1, wc2, w_time, pos_emb, pred_len)

    out_ref, gate_ref = reference_forward(*args)

    # 1) default (perf-oriented) tiles: large resident blocks, >=2 parallel j blocks
    out, gate = adaptive_fusion(*args)
    out = jax.block_until_ready(out)
    gate = jax.block_until_ready(gate)
    assert out.shape == (B, pred_len, d_model)
    assert gate.shape == (B, pred_len, d_model)
    np.testing.assert_allclose(np.asarray(out), np.asarray(out_ref), rtol=2e-2, atol=2e-2)
    np.testing.assert_allclose(np.asarray(gate), np.asarray(gate_ref), rtol=2e-2, atol=2e-2)

    # 2) small-tk run to exercise the multi-step pipelined accumulation path
    out2, gate2 = adaptive_fusion(*args, tk=128)
    out2 = jax.block_until_ready(out2)
    gate2 = jax.block_until_ready(gate2)
    np.testing.assert_allclose(np.asarray(out2), np.asarray(out_ref), rtol=2e-2, atol=2e-2)
    np.testing.assert_allclose(np.asarray(gate2), np.asarray(gate_ref), rtol=2e-2, atol=2e-2)

    print("KERNEL_OK")
</pallas_src>

<mosaic_0001>
module attributes {stable_mosaic.version = 11 : i64} {
  func.func @reg_gemm_kernel(%arg0: i32, %arg1: i32, %arg2: memref<2x256xbf16, #tpu.memory_space<vmem>>, %arg3: memref<256x256xbf16, #tpu.memory_space<vmem>>, %arg4: memref<1x256xf32, #tpu.memory_space<vmem>>, %arg5: memref<2x256xf32, #tpu.memory_space<vmem>>) attributes {dimension_semantics = [#tpu.dimension_semantics<parallel>, #tpu.dimension_semantics<arbitrary>], iteration_bounds = array<i64: 2, 1>, scalar_prefetch = 0 : i64, scratch_operands = 0 : i64, tpu.core_type = #tpu.core_type<tc>, window_params = [{pipeline_mode = #tpu.pipeline_mode<synchronous>, transform_indices = @transform_0, window_bounds = array<i64: 2, 256>}, {transform_indices = @transform_1, window_bounds = array<i64: 256, 256>}, {transform_indices = @transform_2, window_bounds = array<i64: 1, 256>}, {transform_indices = @transform_3, window_bounds = array<i64: 2, 256>}]} {
    %c0_i32 = arith.constant 0 : i32
    %0 = arith.cmpi eq, %arg1, %c0_i32 : i32
    %1 = arith.extui %0 : i1 to i32
    %c0_i32_0 = arith.constant 0 : i32
    %2 = arith.cmpi ne, %1, %c0_i32_0 : i32
    scf.if %2 {
      %cst_9 = arith.constant 0.000000e+00 : f32
      %15 = vector.broadcast %cst_9 : f32 to vector<2x256xf32>
      %c0_10 = arith.constant 0 : index
      %c0_11 = arith.constant 0 : index
      %16 = vector.load %arg5[%c0_10, %c0_11] : memref<2x256xf32, #tpu.memory_space<vmem>>, vector<2x256xf32>
      tpu.vector_store %arg5[%c0_10, %c0_11], %15 {strides = array<i32>} : memref<2x256xf32, #tpu.memory_space<vmem>>, vector<2x256xf32>,
    } else {
    }
    %c256_i32 = arith.constant 256 : i32
    %3 = arith.muli %arg1, %c256_i32 : i32
    %4 = tpu.assume_multiple %3, 256 : i32
    %c0 = arith.constant 0 : index
    %c0_1 = arith.constant 0 : index
    %5 = vector.load %arg5[%c0, %c0_1] : memref<2x256xf32, #tpu.memory_space<vmem>>, vector<2x256xf32>
    %c0_2 = arith.constant 0 : index
    %6 = arith.index_cast %4 : i32 to index
    %7 = vector.load %arg2[%c0_2, %6] : memref<2x256xbf16, #tpu.memory_space<vmem>>, vector<2x256xbf16>
    %c0_3 = arith.constant 0 : index
    %c0_4 = arith.constant 0 : index
    %8 = vector.load %arg3[%c0_3, %c0_4] : memref<256x256xbf16, #tpu.memory_space<vmem>>, vector<256x256xbf16>
    %cst = arith.constant dense<0.000000e+00> : vector<2x256xf32>
    %9 = tpu.matmul %7, %8, %cst {dimension_numbers = #tpu.dot_dimension_numbers<[1], [0], [0], [1], [0, 0, 1, 1], [], []>} : vector<2x256xbf16>, vector<256x256xbf16>, vector<2x256xf32> -> vector<2x256xf32>
    %10 = arith.addf %5, %9 : vector<2x256xf32>
    %c0_5 = arith.constant 0 : index
    %c0_6 = arith.constant 0 : index
    %11 = vector.load %arg5[%c0_5, %c0_6] : memref<2x256xf32, #tpu.memory_space<vmem>>, vector<2x256xf32>
    tpu.vector_store %arg5[%c0_5, %c0_6], %10 {strides = array<i32>} : memref<2x256xf32, #tpu.memory_space<vmem>>, vector<2x256xf32>,
    %c0_i32_7 = arith.constant 0 : i32
    %12 = arith.cmpi eq, %arg1, %c0_i32_7 : i32
    %13 = arith.extui %12 : i1 to i32
    %c0_i32_8 = arith.constant 0 : i32
    %14 = arith.cmpi ne, %13, %c0_i32_8 : i32
    scf.if %14 {
      %c0_9 = arith.constant 0 : index
      %c0_10 = arith.constant 0 : index
      %15 = vector.load %arg5[%c0_9, %c0_10] : memref<2x256xf32, #tpu.memory_space<vmem>>, vector<2x256xf32>
      %c0_11 = arith.constant 0 : index
      %c0_12 = arith.constant 0 : index
      %16 = vector.load %arg4[%c0_11, %c0_12] : memref<1x256xf32, #tpu.memory_space<vmem>>, vector<1x256xf32>
      %17 = vector.broadcast %16 : vector<1x256xf32> to vector<2x256xf32>
      %18 = arith.addf %15, %17 : vector<2x256xf32>
      %c0_13 = arith.constant 0 : index
      %c0_14 = arith.constant 0 : index
      %19 = vector.load %arg5[%c0_13, %c0_14] : memref<2x256xf32, #tpu.memory_space<vmem>>, vector<2x256xf32>
      tpu.vector_store %arg5[%c0_13, %c0_14], %18 {strides = array<i32>} : memref<2x256xf32, #tpu.memory_space<vmem>>, vector<2x256xf32>,
    } else {
    }
    return
  }
  func.func @transform_0(%arg0: i32, %arg1: i32) -> (i32, i32) {
    %c0_i32 = arith.constant 0 : i32
    %c0_i32_0 = arith.constant 0 : i32
    %c0_i32_1 = arith.constant 0 : i32
    return %c0_i32, %c0_i32_0 : i32, i32
  }
  func.func @transform_1(%arg0: i32, %arg1: i32) -> (i32, i32) {
    %c0_i32 = arith.constant 0 : i32
    return %arg1, %arg0 : i32, i32
  }
  func.func @transform_2(%arg0: i32, %arg1: i32) -> (i32, i32) {
    %c0_i32 = arith.constant 0 : i32
    %c0_i32_0 = arith.constant 0 : i32
    return %c0_i32, %arg0 : i32, i32
  }
  func.func @transform_3(%arg0: i32, %arg1: i32) -> (i32, i32) {
    %c0_i32 = arith.constant 0 : i32
    %c0_i32_0 = arith.constant 0 : i32
    return %c0_i32, %arg0 : i32, i32
  }
}

</mosaic_0001>

<bundles_post_ra>
// kernel: tpu_custom_call.1
= control target key start
LH: loop header
LB: loop body
LE: loop exit
PB: predicated region body
PF: predicated region fallthrough
CT: control target
= control target key end

     0   :  { %8 = vsyncpa [#allocation3], 0  ;;  %s1293_s0 = inlined_call_operand.hbm [shape: bf16[2,256], index: 0, kind: input, shape index: {}]   ;;  %s1294_s1 = inlined_call_operand.hbm [shape: bf16[256,512], index: 1, kind: input, shape index: {}]   ;;  %s1295_s2 = inlined_call_operand.vmem [shape: f32[1,512], index: 2, kind: input, shape index: {}]   ;;  %s1296_s3 = inlined_call_operand.hbm [shape: f32[2,512], index: 3, kind: output, shape index: {}]  }
   0x1   :  { %9 = vsyncpa [#allocation6], 0 }
   0x2   :  { %11 = vsyncpa [#allocation6 + $0x1], 0 }
   0x3   :  { %12 = vsyncpa [#allocation4], 0 }
   0x4   :  { %14 = vsyncpa [#allocation4 + $0x1], 0  ;;  %s1021_s12 = smov 0   ;;  %s1023_s13 = smov 0  }
   0x5   :  { %s1025_s14 = smov 0   ;;  %s1027_s15 = smov 0  }
   0x6   :  { %s1029_s16 = smov 0   ;;  %s1031_s17 = smov 0  }
   0x7 LB: > { %s666_s18 = sadd.s32 4294967295, %s990_s17   ;;  %s667_s19 = sadd.s32 4294967294, %s990_s17   ;;  %s990_s17 = sphi %s1031_s17, %s20_s17   ;;  %s986_s16 = sphi %s1029_s16, %s1324_s16   ;;  %s982_s15 = sphi %s1027_s15, %s1323_s15   ;;  %s978_s14 = sphi %s1025_s14, %s1322_s14   ;;  %s974_s13 = sphi %s1023_s13, %s1321_s13   ;;  %s970_s12 = sphi %s1021_s12, %s1320_s12  }
   0x8   : > { %s62_s20 = sadd.s32 1, %s978_s14  ;;  %p69_p0 = scmp.ne.s32.totalorder %s978_s14, %s974_s13 }
   0x9   : > { %p70_p1 = scmp.eq.s32.totalorder %s990_s17, 0  ;;  %p75_p2 = scmp.ne.s32.totalorder %s974_s13, %s970_s12 }
   0xa   : > { %p1059_p3 = scmp.eq.s32.totalorder %s666_s18, 0  ;;  %p125_p4 = scmp.eq.s32.totalorder %s666_s18, 1 }
   0xb   : > { %p1063_p5 = por %p70_p1, %p69_p0  ;;  %p131_p6 = scmp.eq.s32.totalorder %s667_s19, 1 }
   0xc   : > { %s1303_s21 = scalar_select %p1059_p3, 1, 0 }
   0xd   : > { %p1069_p7 = por %p1059_p3, %p75_p2  ;;  %p1073_p8 = por %p125_p4, %p69_p0 }
   0xe   : > { %p1077_p9 = por %p131_p6, %p75_p2  ;;  %p668_p10 = scmp.ge.s32.totalorder %s990_s17, 1 }
   0xf   : > { %s1305_s23 = scalar_select %p1069_p7, 1, 0 }
  0x10   : > { %s1306_s24 = scalar_select %p1073_p8, 1, 0 }
  0x11   : > { %s1307_s25 = scalar_select %p1077_p9, 1, 0 }
  0x12   : > { %p138_p11 = scmp.lt.s32.totalorder %s990_s17, 3  ;;  %s992_s27 = smov [#allocation2]  }
  0x13   : > { %s151_s28 = sshll.u32 %s992_s27, 4  ;;  %p740_p1 = scmp.lt.s32.totalorder %s990_s17, 2  ;;  %s152_s28 = int_to_ptr.vmem [resolvable:$true] %s151_s28 }
  0x14   : > { %p1084_p13 = pnand %p668_p10, %p138_p11  ;;  %s32_s4 = sadd.s32 1, %s986_s16 }
  0x15   : > { %p1093_p4 = pnand %p740_p1, %p1063_p5  ;;  %p1104_p6 = scmp.ge.s32.totalorder %s32_s4, 2 }
  0x16   : > { %s1308_s26 = scalar_select %p1084_p13, 1, 0 }
  0x17   : > { %p727_p0 = pneg %p1084_p13  ;;  %s162_s6 = sand.u32 1, %s978_s14  }
  0x18   : > { %s1309_s29 = scalar_select %p1093_p4, 1, 0 }
  0x19   : > { %p1099_p2 = pnand %p727_p0, %p1059_p3  ;;  %s846_s9 = scalar_lea.hbm %s1293_s0, 32 }
  0x1a   : > { %s1311_s5 = scalar_select %p1104_p6, 1, 0 }
  0x1b   : > { %p847_p5 = scmp.ne.s32.totalorder %s1293_s0, %s846_s9  ;;  %p848_p10 = pneg %p1099_p2 }
  0x1c   : > { %p853_p0 = scmp.lt.u32.totalorder %s846_s9, %s1293_s0 }
  0x1d   : > { %p849_p11 = pnand %p848_p10, %p847_p5 }
  0x1f   : > { %p850_p1 = pneg %p849_p11 }
  0x21   : > { %p855_p12 = pnand %p853_p0, %p850_p1 }
  0x23   : > { %858 = shalt.err (!%p855_p12)
}
  0x24   : > { %s859_s22 = scalar_lea.vmem %s152_s28, 32  ;;  %p867_p3 = scmp.lt.s32.totalorder %s152_s28, %s152_s28 }
  0x25   : > { %p860_p9 = scmp.ne.s32.totalorder %s152_s28, %s859_s22  ;;  %p868_p13 = scmp.lt.s32.totalorder %s859_s22, %s859_s22 }
  0x27   : > { %p862_p8 = pnand %p860_p9, %p848_p10  ;;  %p869_p4 = por %p868_p13, %p867_p3 }
  0x29   : > { %p863_p7 = pneg %p862_p8 }
  0x2b   : > { %p870_p6 = pnand %p869_p4, %p863_p7 }
  0x2d   : > { %873 = shalt.err (!%p870_p6)
}
  0x2e   : > { %730 = dma.hbm_to_vmem [thread:$0]  (!%p1099_p2), %s1293_s0, 32, %s152_s28, [#allocation3]  }
  0x2f   : > { %p1312_p9 = scmp.ne.s32.totalorder %s1311_s5, 0  ;;  %s671_s8 = sshll.u32 %s162_s6, 8 }
  0x30   : > { %s717_s10 = sshll.u32 %s986_s16, 7  ;;  %s166_s19 = scalar_lea.vmem [#allocation5], %s671_s8 }
  0x31   : > { %s1326_s4 = smov (%p1312_p9, %s32_s4), 0  ;;  %s1135_s18 = scalar_lea.hbm %s1294_s1, %s717_s10 }
  0x32   : > { %s58_s9 = ssub.s32 %s986_s16, %s1326_s4  ;;  %s176_s22 = sshll.u32 %s166_s19, 4  ;;  %s1142_s22 = int_to_ptr.vmem [resolvable:$true] %s176_s22 }
  0x33   : > { %p60_p3 = scmp.eq.s32.totalorder %s58_s9, 0  ;;  %s1144_s5 = scalar_lea.sflag [#allocation6], %s162_s6 }
  0x34   : > { %s874_s27 = scalar_lea.hbm %s1135_s18, 4096  ;;  %p1313_p8 = scmp.ne.s32.totalorder %s1309_s29, 0 }
  0x35   : > { %s1140_s28 = scalar_select %p60_p3, %s978_s14, %s62_s20  }
  0x36   : > { %p875_p7 = scmp.ne.s32.totalorder %s1135_s18, %s874_s27  ;;  %p876_p12 = pneg %p1313_p8 }
  0x37   : > { %s879_s8 = scalar_lea.hbm %s1294_s1, 8192  ;;  %p880_p2 = scmp.lt.u32.totalorder %s1135_s18, %s1294_s1 }
  0x38   : > { %p877_p13 = pnand %p876_p12, %p875_p7  ;;  %p881_p6 = scmp.lt.u32.totalorder %s879_s8, %s874_s27 }
  0x39   : > { %p883_p10 = scmp.lt.u32.totalorder %s874_s27, %s1135_s18 }
  0x3a   : > { %p878_p4 = pneg %p877_p13  ;;  %p882_p5 = por %p881_p6, %p880_p2 }
  0x3c   : > { %p884_p11 = por %p883_p10, %p882_p5 }
  0x3e   : > { %p885_p1 = pnand %p884_p11, %p878_p4 }
  0x40   : > { %888 = shalt.err (!%p885_p1)
}
  0x41   : > { %s889_s20 = scalar_lea.vmem %s1142_s22, 4096  ;;  %s993_s6 = smov [#allocation5]  }
  0x42   : > { %p890_p0 = scmp.ne.s32.totalorder %s1142_s22, %s889_s20  ;;  %s894_s11 = sshll.u32 %s993_s6, 4  ;;  %s895_s11 = int_to_ptr.vmem [resolvable:$false] %s894_s11 }
  0x43   : > { %s896_s19 = scalar_lea.vmem %s895_s11, 8192  ;;  %p897_p7 = scmp.lt.s32.totalorder %s1142_s22, %s895_s11 }
  0x44   : > { %p892_p9 = pnand %p890_p0, %p876_p12  ;;  %p898_p13 = scmp.lt.s32.totalorder %s896_s19, %s889_s20 }
  0x46   : > { %p893_p3 = pneg %p892_p9  ;;  %p899_p2 = por %p898_p13, %p897_p7 }
  0x48   : > { %p900_p6 = pnand %p899_p2, %p893_p3 }
  0x4a   : > { %903 = shalt.err (!%p900_p6)
}
  0x4b   : > { %s994_s27 = smov 256   ;;  %s995_s7 = smov 128  }
  0x4c   : > { %s996_s9 = smov 8   ;;  %p1314_p12 = scmp.ne.s32.totalorder %s1308_s26, 0 }
  0x4d   : > { %734 = dma.hbm_to_vmem [thread:$0]  (!%p1313_p8), %s1135_s18, 4096, %s1142_s22, %s1144_s5, %s994_s27, %s995_s7, %s996_s9  }
  0x4e   : > { %196 = sbr.rel (%p1314_p12) target bundleno = 398 (0x18e), region = 32  ;;  %p1315_p4 = scmp.ne.s32.totalorder (!%p1314_p12), %s1303_s21, 0 }
  0x55   : > { %957 = dma.done.wait (%p1315_p4), [#allocation3], 32  }
  0x56   : > { %959 = vsyncadd (%p1315_p4), [#allocation3], 4294967264  ;;  %s1179_s8 = sand.u32 1, %s974_s13   ;;  %p1316_p8 = scmp.ne.s32.totalorder %s1305_s23, 0 }
  0x57   : > { %s676_s10 = sshll.u32 %s1179_s8, 8  ;;  %s203_s30 = scalar_lea.sflag [#allocation6], %s1179_s8 }
  0x58   : > { %s1183_s20 = scalar_lea.vmem [#allocation5], %s676_s10 }
  0x59   : > { %961 = dma.done.wait (%p1316_p8), %s203_s30, 4096  }
  0x5a   : > { %963 = vsyncadd (%p1316_p8), %s203_s30, 4294963200  ;;  %v798_v0 = vld [vmem:[%s1183_s20 + $0x4] ss:$8 sps:$4 sm:$0xff]   ;;  %v800_v1 = vld [vmem:[%s1183_s20] ss:$8 sps:$4 sm:$0xff]   ;;  %v296_v11 = vlaneseq  ;;  %s677_s21 = sshll.u32 %s1179_s8, 2 }
  0x5b   : > { %469 = vmatprep.subr.bf16.mxu0 %v798_v0  ;;  %v801_v2 = vld [vmem:[%s1183_s20 + $0x14] ss:$8 sps:$4 sm:$0xff]   ;;  %v803_v3 = vld [vmem:[%s1183_s20 + $0x10] ss:$8 sps:$4 sm:$0xff]   ;;  %v804_v4 = vld [vmem:[%s1183_s20 + $0x24] ss:$8 sps:$4 sm:$0xff]  }
  0x5c   : > { %470 = vmatpush1.bf16.msra.mxu0 %v800_v1  ;;  %v806_v5 = vld [vmem:[%s1183_s20 + $0x20] ss:$8 sps:$4 sm:$0xff]   ;;  %v807_v6 = vld [vmem:[%s1183_s20 + $0x34] ss:$8 sps:$4 sm:$0xff]   ;;  %v809_v7 = vld [vmem:[%s1183_s20 + $0x30] ss:$8 sps:$4 sm:$0xff]  }
  0x5d   : > { %471 = vmatprep.subr.bf16.mxu0 %v801_v2  ;;  %v810_v8 = vld [vmem:[%s1183_s20 + $0x44] ss:$8 sps:$4 sm:$0xff]   ;;  %v997_v9 = vmov 1966171168   ;;  %v812_v12 = vld [vmem:[%s1183_s20 + $0x40] ss:$8 sps:$4 sm:$0xff]  }
  0x5e   : > { %v294_v10 = vunpack.c.l.s4 %v997_v9  ;;  %v813_v13 = vld [vmem:[%s1183_s20 + $0x54] ss:$8 sps:$4 sm:$0xff]   ;;  %v1200_v15 = vshrl.u32 %v296_v11, 7  ;;  %v815_v16 = vld [vmem:[%s1183_s20 + $0x50] ss:$8 sps:$4 sm:$0xff]   ;;  %s1225_s23 = scalar_lea.vmem [#allocation7], %s677_s21 }
  0x5f   : > { %v816_v17 = vld [vmem:[%s1183_s20 + $0x64] ss:$8 sps:$4 sm:$0xff]   ;;  %v679_v19 = vld.sshfl [vmem:[#allocation2] sm:$0x11 pattern:$0x75316420] }
  0x60   : > { %472 = vmatpush1.bf16.msra.mxu0 %v803_v3  ;;  %v295_v14 = vunpack.c.0.s8 %v294_v10  ;;  %v292_v20 = vcombine.high %v679_v19, %v679_v19  ;;  %v818_v21 = vld [vmem:[%s1183_s20 + $0x60] ss:$8 sps:$4 sm:$0xff]   ;;  %v819_v22 = vld [vmem:[%s1183_s20 + $0x74] ss:$8 sps:$4 sm:$0xff]   ;;  %v821_v24 = vld [vmem:[%s1183_s20 + $0x70] ss:$8 sps:$4 sm:$0xff]  }
  0x61   : > { %473 = vmatprep.subr.bf16.mxu0 %v804_v4  ;;  %v822_v25 = vld [vmem:[%s1183_s20 + $0x84] ss:$8 sps:$4 sm:$0xff]   ;;  %v824_v26 = vld [vmem:[%s1183_s20 + $0x80] ss:$8 sps:$4 sm:$0xff]   ;;  %v825_v27 = vld [vmem:[%s1183_s20 + $0x94] ss:$8 sps:$4 sm:$0xff]  }
  0x62   : > { %v298_v18 = vsub.s32 %v295_v14, %v1200_v15  ;;  %v827_v28 = vld [vmem:[%s1183_s20 + $0x90] ss:$8 sps:$4 sm:$0xff]   ;;  %v828_v29 = vld [vmem:[%s1183_s20 + $0xa4] ss:$8 sps:$4 sm:$0xff]   ;;  %v830_v30 = vld [vmem:[%s1183_s20 + $0xa0] ss:$8 sps:$4 sm:$0xff]  }
  0x63   : > { %v831_v31 = vld [vmem:[%s1183_s20 + $0xb4] ss:$8 sps:$4 sm:$0xff]   ;;  %v833_v32 = vld [vmem:[%s1183_s20 + $0xb0] ss:$8 sps:$4 sm:$0xff]   ;;  %v834_v33 = vld [vmem:[%s1183_s20 + $0xc4] ss:$8 sps:$4 sm:$0xff]  }
  0x64   : > { %474 = vmatpush1.bf16.msra.mxu0 %v806_v5  ;;  %v306_v23 = vrot.slane %v292_v20, %v298_v18  ;;  %v836_v34 = vld [vmem:[%s1183_s20 + $0xc0] ss:$8 sps:$4 sm:$0xff]   ;;  %v837_v35 = vld [vmem:[%s1183_s20 + $0xd4] ss:$8 sps:$4 sm:$0xff]   ;;  %v839_v36 = vld [vmem:[%s1183_s20 + $0xd0] ss:$8 sps:$4 sm:$0xff]   ;;  %v299_v41 = vrot.slane %v679_v19, %v298_v18 }
  0x65   : > { %475 = vmatprep.subr.bf16.mxu0 %v807_v6  ;;  %v840_v37 = vld [vmem:[%s1183_s20 + $0xe4] ss:$8 sps:$4 sm:$0xff]   ;;  %v842_v38 = vld [vmem:[%s1183_s20 + $0xe0] ss:$8 sps:$4 sm:$0xff]   ;;  %v843_v39 = vld [vmem:[%s1183_s20 + $0xf4] ss:$8 sps:$4 sm:$0xff]  }
  0x66   : > { %501 = vmatprep.mubr.bf16.mxu0 %v306_v23  ;;  %v845_v40 = vld [vmem:[%s1183_s20 + $0xf0] ss:$8 sps:$4 sm:$0xff]   ;;  %v998_v42 = vmov 0.0   ;;  %s678_s26 = sshll.u32 %s982_s15, 1  ;;  %v999_v43 = vmov 1983009808  }
  0x67   : > { %245 = vst [vmem:[%s1225_s23] sm:$0xf] %v998_v42  ;;  %p236_p5 = scmp.lt.s32.totalorder %s678_s26, 3  ;;  %v514_v44 = vunpack.c.l.s4 %v999_v43  ;;  %v531_v48 = vsub.s32 0, %v1200_v15  ;;  %v535_v49 = vsub.s32 1, %v1200_v15  ;;  %s718_s5 = sshll.u32 %s982_s15, 6 }
  0x68   : > { %476 = vmatpush1.bf16.msra.mxu0 %v809_v7  ;;  %s563_s6 = sshll.u32 %s1225_s23, 4  ;;  %s1243_s27 = scalar_lea.hbm %s1296_s3, %s718_s5  ;;  %s1245_s6 = int_to_ptr.vmem [resolvable:$true] %s563_s6 }
  0x69   : > { %477 = vmatprep.subr.bf16.mxu0 %v810_v8  ;;  %s1328_s26 = smov (!%p236_p5, %s678_s26), 3  ;;  %v515_v45 = vunpack.c.0.s8 %v514_v44  ;;  %s549_s7 = scalar_lea.sflag [#allocation4], %s1179_s8 }
  0x6a   : > { %s238_s22 = scalar_lea.vmem %s1295_s2, %s1328_s26  ;;  %s904_s9 = scalar_lea.vmem %s1245_s6, 64 }
  0x6b   : > { %v518_v47 = vsub.s32 %v515_v45, %v1200_v15  ;;  %v527_v51 = vld [vmem:[%s238_s22] sm:$0x3]  ;;  %p905_p10 = scmp.ne.s32.totalorder %s1245_s6, %s904_s9  ;;  %p1317_p11 = scmp.ne.s32.totalorder %s1306_s24, 0 }
  0x6c   : > { %478 = vmatpush1.bf16.msra.mxu0 %v812_v12  ;;  %v532_v57 = vrot.slane %v527_v51, %v531_v48  ;;  %v536_v58 = vrot.slane %v527_v51, %v535_v49  ;;  %s1000_s15 = smov [#allocation7]  }
  0x6d   : > { %479 = vmatprep.subr.bf16.mxu0 %v813_v13  ;;  %p906_p1 = pnand %p905_p10, %p1317_p11  ;;  %s908_s10 = sshll.u32 %s1000_s15, 4  ;;  %s909_s10 = int_to_ptr.vmem [resolvable:$false] %s908_s10 }
  0x6e   : > { %v247_v54 = vld [vmem:[%s1225_s23] sm:$0xf]  ;;  %v537_v60 = vcombine.low %v532_v57, %v536_v58  ;;  %s910_s30 = scalar_lea.vmem %s909_s10, 128  ;;  %p911_p9 = scmp.lt.s32.totalorder %s1245_s6, %s909_s10 }
  0x6f   : > { %p907_p0 = pneg %p906_p1  ;;  %p912_p3 = scmp.lt.s32.totalorder %s910_s30, %s904_s9 }
  0x70   : > { %480 = vmatpush1.bf16.msra.mxu0 %v815_v16  ;;  %v544_v61 = vrot.slane %v537_v60, %v518_v47 }
  0x71   : > { %481 = vmatprep.subr.bf16.mxu0 %v816_v17  ;;  %p913_p7 = por %p912_p3, %p911_p9 }
  0x73   : > { %p914_p13 = pnand %p913_p7, %p907_p0 }
  0x74   : > { %482 = vmatpush1.bf16.msra.mxu0 %v818_v21 }
  0x75   : > { %483 = vmatprep.subr.bf16.mxu0 %v819_v22 }
  0x78   : > { %484 = vmatpush1.bf16.msra.mxu0 %v821_v24 }
  0x79   : > { %485 = vmatprep.subr.bf16.mxu0 %v822_v25 }
  0x7c   : > { %486 = vmatpush1.bf16.msra.mxu0 %v824_v26 }
  0x7d   : > { %487 = vmatprep.subr.bf16.mxu0 %v825_v27 }
  0x80   : > { %488 = vmatpush1.bf16.msra.mxu0 %v827_v28 }
  0x81   : > { %489 = vmatprep.subr.bf16.mxu0 %v828_v29 }
  0x84   : > { %490 = vmatpush1.bf16.msra.mxu0 %v830_v30 }
  0x85   : > { %491 = vmatprep.subr.bf16.mxu0 %v831_v31 }
  0x88   : > { %492 = vmatpush1.bf16.msra.mxu0 %v833_v32 }
  0x89   : > { %493 = vmatprep.subr.bf16.mxu0 %v834_v33 }
  0x8c   : > { %494 = vmatpush1.bf16.msra.mxu0 %v836_v34 }
  0x8d   : > { %495 = vmatprep.subr.bf16.mxu0 %v837_v35 }
  0x90   : > { %496 = vmatpush1.bf16.msra.mxu0 %v839_v36 }
  0x91   : > { %497 = vmatprep.subr.bf16.mxu0 %v840_v37 }
  0x94   : > { %498 = vmatpush1.bf16.msra.mxu0 %v842_v38 }
  0x95   : > { %499 = vmatprep.subr.bf16.mxu0 %v843_v39 }
  0x98   : > { %500 = vmatpush1.bf16.msra.mxu0 %v845_v40 }
  0x9b   : > { %502 = vmatmul.mubr.bf16.vlgmr.msra.gmra.mrb[0].mxu0 %v299_v41 }
 0x16e   : > { %v503_v46 = vpop.f32.mrb[0].mxu0 }
 0x16f   : > { %v505_v50 = vpop.f32.mrb[1].mxu0 }
 0x170   : > { %v512_v52 = vcombine.low %v503_v46, %v505_v50  ;;  %v507_v53 = vpop.f32.mrb[2].mxu0 }
 0x171   : > { %v508_v55 = vpop.f32.mrb[3].mxu0 }
 0x172   : > { %v519_v56 = vrot.slane %v512_v52, %v518_v47 }
 0x174   : > { %v521_v59 = vadd.f32 %v519_v56, %v247_v54 }
 0x176   : > { %522 = vst [vmem:[%s1225_s23] sm:$0xf] %v521_v59 }
 0x17d   : > { %v526_v62 = vld [vmem:[%s1225_s23] sm:$0xf] }
 0x17e   : > { %v546_v63 = vadd.f32 %v544_v61, %v526_v62 }
 0x180   : > { %547 = vst [vmem:[%s1225_s23] sm:$0xf] %v546_v63 }
 0x181   : > { %917 = shalt.err (!%p914_p13)
}
 0x182   : > { %s918_s8 = scalar_lea.hbm %s1243_s27, 64  ;;  %s922_s23 = scalar_lea.hbm %s1296_s3, 128 }
 0x183   : > { %p919_p2 = scmp.ne.s32.totalorder %s1243_s27, %s918_s8  ;;  %p923_p4 = scmp.lt.u32.totalorder %s1243_s27, %s1296_s3 }
 0x184   : > { %p924_p8 = scmp.lt.u32.totalorder %s922_s23, %s918_s8  ;;  %p926_p10 = scmp.lt.u32.totalorder %s918_s8, %s1243_s27 }
 0x185   : > { %p920_p6 = pnand %p919_p2, %p1317_p11 }
 0x186   : > { %p925_p5 = por %p924_p8, %p923_p4 }
 0x187   : > { %p921_p12 = pneg %p920_p6 }
 0x188   : > { %p927_p1 = por %p926_p10, %p925_p5 }
 0x18a   : > { %p928_p0 = pnand %p927_p1, %p921_p12 }
 0x18c   : > { %931 = shalt.err (!%p928_p0)
}
 0x18d   : > { %725 = dma.vmem_to_hbm [thread:$0]  (%p1317_p11), %s1245_s6, 64, %s1243_s27, %s549_s7  }
 0x18e PF: > { %s575_s18 = sand.u32 1, %s970_s12   ;;  %p1318_p9 = scmp.ne.s32.totalorder %s1307_s25, 0 }
 0x18f   : > { %p1319_p3 = scmp.ge.s32.totalorder %s990_s17, 2  ;;  %s576_s22 = scalar_lea.sflag [#allocation4], %s575_s18 }
 0x191   : > { %p736_p7 = pnand %p1319_p3, %p1318_p9 }
 0x193   : > { %965 = dma.done.wait (!%p736_p7), %s576_s22, 64  }
 0x194   : > { %967 = vsyncadd (!%p736_p7), %s576_s22, 4294967232  ;;  %s20_s17 = sadd.s32 1, %s990_s17   ;;  %s1320_s12 = smov %s974_s13 }
 0x195   : > { %p17_p13 = scmp.ge.s32.totalorder %s20_s17, 4   ;;  %s1321_s13 = smov %s978_s14 }
 0x196   : > { %s1322_s14 = smov %s1140_s28  ;;  %s1323_s15 = smov %s986_s16 }
 0x197   : > { %s1324_s16 = smov %s1326_s4  ;;  %19 = sbr.rel (!%p17_p13) target bundleno = 7 (0x7), region = 94 }
 0x19e   :  { %581 = vsyncpa [#allocation3], 1 }
 0x19f   :  { %583 = vsyncpa [#allocation3 + $0x1], 1 }
 0x1a0   :  { %584 = vsyncpa [#allocation6], 1 }
 0x1a1   :  { %586 = vsyncpa [#allocation6 + $0x1], 1 }
 0x1a2   :  { %587 = vsyncpa [#allocation4], 1 }
 0x1a3   :  { %589 = vsyncpa [#allocation4 + $0x1], 1 }

</bundles_post_ra>
